<compile_context>
chip_gen: v6e
topology: v6e:2x2x1
jax: 0.10.0
libtpu: 0.0.40
codegen_flags: <defaults>
</compile_context>

<pallas_src>
import jax
import jax.numpy as jnp
import numpy as np
from jax.experimental import pallas as pl
from jax.experimental.pallas import tpu as pltpu

NEG_SLOPE = 0.2
LANE = 128
SUBLANE = 8


def _leaky(v):
    # one vmul + vmax (valid because 0 < NEG_SLOPE < 1)
    return jnp.maximum(v, NEG_SLOPE * v)


def _round_up(v, m):
    return (v + m - 1) // m * m


def _pad_to(m, rows=None, cols=None):
    r = m.shape[0] if rows is None else rows
    c = m.shape[1] if cols is None else cols
    return jnp.pad(m, ((0, r - m.shape[0]), (0, c - m.shape[1])))


def interp_matrix(out_size, in_size):
    """1-D linear interpolation matrix, align_corners=True (bilinear = separable)."""
    if out_size == 1 or in_size == 1:
        m = jnp.zeros((out_size, in_size), jnp.float32)
        return m.at[:, 0].set(1.0)
    i = jnp.arange(out_size, dtype=jnp.float32)
    src = i * (in_size - 1) / (out_size - 1)
    i0 = jnp.clip(jnp.floor(src), 0, in_size - 1).astype(jnp.int32)
    i1 = jnp.clip(i0 + 1, 0, in_size - 1)
    frac = src - i0.astype(jnp.float32)
    rows = jnp.arange(out_size)
    m = jnp.zeros((out_size, in_size), jnp.float32)
    m = m.at[rows, i0].add(1.0 - frac)
    m = m.at[rows, i1].add(frac)
    return m


# ----------------------------- Pallas kernel ------------------------------ #
def make_transfire_kernel(pad_sq, pad_h):
    """pad_sq / pad_h are the (sublane-aligned) row counts of the squeeze and
    shifted-squeeze blocks inside the combined row-operator output."""

    def kernel(x_ref, ksq_ref, ucomb_ref, bs_ref, ke1_ref, b1_ref,
               k2_ref, b2_ref, ry1_ref, kx1_ref, ry2_ref, kx2_ref,
               o1_ref, o2_ref):
        f32 = jnp.float32

        def dot(a, b):
            return jnp.dot(a, b, preferred_element_type=f32)

        # squeeze1 channel matmul + W-axis zero-stuffing (folded into KsqKw)
        y = dot(x_ref[...], ksq_ref[...])                 # (N*H, lane_sq)

        # combined row operator: [H-upsample ; dh=0 slice ; dh=1 slice]
        act = _leaky(dot(ucomb_ref[...], y) + bs_ref[...])   # (pad_sq+2*pad_h, lane_sq)
        sq = act[:pad_sq]                                     # squeeze1 output
        s01 = jnp.concatenate(
            [act[pad_sq:pad_sq + pad_h],
             act[pad_sq + pad_h:pad_sq + 2 * pad_h]], axis=1)  # (pad_h, 2*lane_sq)

        # expand1x1: block-diag kron(I, W1) matmul + bias + leaky
        z1 = _leaky(dot(sq, ke1_ref[...]) + b1_ref[...])       # (pad_sq, lane_e1)

        # expand2x2: single matmul against the stacked (2*lane_sq, lane_e2) operator
        z2 = _leaky(dot(s01, k2_ref[...]) + b2_ref[...])       # (pad_h, lane_e2)

        # bilinear resize (align_corners=True) as separable interpolation matmuls
        o1_ref[...] = dot(dot(ry1_ref[...], z1), kx1_ref[...]).astype(o1_ref.dtype)
        o2_ref[...] = dot(dot(ry2_ref[...], z2), kx2_ref[...]).astype(o2_ref.dtype)

    return kernel


# ------------------------------- wrapper ----------------------------------- #
def transfire_forward(x, concat, params):
    """x: (N, Cin, H, W) NCHW, concat: (N, Cc, Hc, Wc) NCHW (like PyTorch)."""
    Ws_, bs_, W1_, b1_, W2_, b2_ = params      # W2_ indexed as [kh, kw, s, e]
    N, Cin, H, W = x.shape
    _, Cc, Hc, Wc = concat.shape
    S = Ws_.shape[1]
    E = W1_.shape[1]
    Hs, Wsp = 2 * H - 1, 2 * W - 1             # squeeze1 output spatial size
    Ho2, Wo2 = Hs - 1, Wsp - 1                 # expand2x2 output spatial size
    f32 = jnp.float32

    # ---- operator matrices (setup, plain JAX) -------------------------------
    # lane widths padded up to multiples of 128 for lane-dense vector code
    lane_sq = _round_up(Wsp * S, LANE)
    lane_e1 = _round_up(Wsp * E, LANE)
    lane_e2 = _round_up(Wo2 * E, LANE)

    # squeeze1: per-pixel channel matmul folded with W-axis zero-stuffing
    Ksq = jnp.kron(jnp.eye(W, dtype=f32), Ws_.astype(f32))            # (W*Cin, W*S)
    Uw = jnp.zeros((Wsp, W), f32).at[2 * jnp.arange(W), jnp.arange(W)].set(1.0)
    Kwup = jnp.kron(Uw.T, jnp.eye(S, dtype=f32))                      # (W*S, Wsp*S)
    KsqKw = _pad_to(Ksq @ Kwup, cols=lane_sq)                         # (W*Cin, lane_sq)
    bs_t = _pad_to(jnp.tile(bs_.astype(f32), (Wsp,))[None, :], cols=lane_sq)

    # expand1x1
    Ke1 = _pad_to(jnp.kron(jnp.eye(Wsp, dtype=f32), W1_.astype(f32)),
                  rows=lane_sq, cols=lane_e1)                         # (lane_sq, lane_e1)
    b1_t = _pad_to(jnp.tile(b1_.astype(f32), (Wsp,))[None, :], cols=lane_e1)

    # expand2x2: per-dh operators (summed over dw) stacked along K
    sel = []
    for dw in range(2):
        sel.append(jnp.zeros((Wsp, Wo2), f32).at[
            dw + jnp.arange(Wo2), jnp.arange(Wo2)].set(1.0))
    k2_blocks = []
    for dh in range(2):
        blk = (jnp.kron(sel[0], W2_[1 - dh, 1].astype(f32)) +
               jnp.kron(sel[1], W2_[1 - dh, 0].astype(f32)))          # (Wsp*S, Wo2*E)
        k2_blocks.append(_pad_to(blk, rows=lane_sq, cols=lane_e2))
    K2 = jnp.concatenate(k2_blocks, axis=0)                           # (2*lane_sq, lane_e2)
    b2_t = _pad_to(jnp.tile(b2_.astype(f32), (Wo2,))[None, :], cols=lane_e2)

    # row operators with the batch folded in: kron(I_N, .), sublane-padded
    Uh = jnp.zeros((Hs, H), f32).at[2 * jnp.arange(H), jnp.arange(H)].set(1.0)
    eyeN = jnp.eye(N, dtype=f32)
    pad_sq = _round_up(N * Hs, SUBLANE)
    pad_h = _round_up(N * Ho2, SUBLANE)
    Ucomb = jnp.concatenate([
        _pad_to(jnp.kron(eyeN, Uh), rows=pad_sq),        # squeeze rows
        _pad_to(jnp.kron(eyeN, Uh[:Ho2]), rows=pad_h),   # dh = 0 slice
        _pad_to(jnp.kron(eyeN, Uh[1:]), rows=pad_h),     # dh = 1 slice
    ], axis=0)                                           # (pad_sq + 2*pad_h, N*H)

    # bilinear interpolation operators (zero cols/rows kill the padded slots)
    Ry1 = _pad_to(jnp.kron(eyeN, interp_matrix(Hc, Hs)), cols=pad_sq)   # (N*Hc, pad_sq)
    Ry2 = _pad_to(jnp.kron(eyeN, interp_matrix(Hc, Ho2)), cols=pad_h)   # (N*Hc, pad_h)
    Kx1 = _pad_to(jnp.kron(interp_matrix(Wc, Wsp).T, jnp.eye(E, dtype=f32)),
                  rows=lane_e1)                                         # (lane_e1, Wc*E)
    Kx2 = _pad_to(jnp.kron(interp_matrix(Wc, Wo2).T, jnp.eye(E, dtype=f32)),
                  rows=lane_e2)                                         # (lane_e2, Wc*E)

    # NCHW -> (N*H, W*Cin) kernel layout
    x2d = jnp.transpose(x, (0, 2, 3, 1)).reshape(N * H, W * Cin).astype(f32)

    operands = [x2d, KsqKw, Ucomb, bs_t, Ke1, b1_t, K2, b2_t, Ry1, Kx1, Ry2, Kx2]
    in_specs = [pl.BlockSpec(a.shape, lambda i: (0, 0)) for a in operands]
    out_specs = (pl.BlockSpec((N * Hc, Wc * E), lambda i: (0, 0)),) * 2
    out_shape = (jax.ShapeDtypeStruct((N * Hc, Wc * E), f32),) * 2

    o1, o2 = pl.pallas_call(
        make_transfire_kernel(pad_sq, pad_h),
        grid=(1,),
        in_specs=in_specs,
        out_specs=out_specs,
        out_shape=out_shape,
        compiler_params=pltpu.CompilerParams(
            dimension_semantics=("arbitrary",)),
    )(*operands)

    # kernel layout -> NCHW, then channel concat (pure glue, matches torch.cat dim=1)
    o1n = jnp.transpose(o1.reshape(N, Hc, Wc, E), (0, 3, 1, 2))
    o2n = jnp.transpose(o2.reshape(N, Hc, Wc, E), (0, 3, 1, 2))
    return jnp.concatenate([o1n, o2n, concat], axis=1)


# ----------------------- pure-JAX reference (for check) -------------------- #
def reference_forward(x, concat, params):
    Ws_, bs_, W1_, b1_, W2_, b2_ = params
    N, Cin, H, W = x.shape
    _, Cc, Hc, Wc = concat.shape
    S, E = Ws_.shape[1], W1_.shape[1]
    Hs, Wsp = 2 * H - 1, 2 * W - 1
    Ho2, Wo2 = Hs - 1, Wsp - 1

    def leaky(v):
        return jnp.where(v > 0, v, NEG_SLOPE * v)

    xn = jnp.transpose(x, (0, 2, 3, 1))                       # NHWC
    y = jnp.einsum('nhwc,cs->nhws', xn, Ws_)
    sq0 = jnp.zeros((N, Hs, Wsp, S), jnp.float32).at[:, ::2, ::2, :].set(y)
    sq = leaky(sq0 + bs_)
    x1 = leaky(jnp.einsum('nhws,se->nhwe', sq, W1_) + b1_)
    acc = jnp.zeros((N, Ho2, Wo2, E), jnp.float32)
    for dh in range(2):
        for dw in range(2):
            acc = acc + jnp.einsum('nhws,se->nhwe',
                                   sq[:, dh:dh + Ho2, dw:dw + Wo2, :],
                                   W2_[1 - dh, 1 - dw])
    x2 = leaky(acc + b2_)
    Ry1, Rx1 = interp_matrix(Hc, Hs), interp_matrix(Wc, Wsp)
    Ry2, Rx2 = interp_matrix(Hc, Ho2), interp_matrix(Wc, Wo2)
    r1 = jnp.einsum('qw,npwe->npqe', Rx1, jnp.einsum('ph,nhwe->npwe', Ry1, x1))
    r2 = jnp.einsum('qw,npwe->npqe', Rx2, jnp.einsum('ph,nhwe->npwe', Ry2, x2))
    return jnp.concatenate([jnp.transpose(r1, (0, 3, 1, 2)),
                            jnp.transpose(r2, (0, 3, 1, 2)),
                            concat], axis=1)


if __name__ == "__main__":
    # small shapes consistent with the module:
    # inplanes=4, s_plane=8, e_plane=8, x spatial 8x8 -> squeeze spatial 15x15,
    # concat spatial 16x16, concat channels 4 -> output (2, 20, 16, 16)
    N, Cin, H, W = 2, 4, 8, 8
    S, E = 8, 8
    Cc, Hc, Wc = 4, 16, 16

    key = jax.random.PRNGKey(0)
    ks = jax.random.split(key, 8)
    x = jax.random.normal(ks[0], (N, Cin, H, W), jnp.float32)
    concat = jax.random.normal(ks[1], (N, Cc, Hc, Wc), jnp.float32)
    params = (
        jax.random.normal(ks[2], (Cin, S), jnp.float32) * 0.3,     # squeeze1 weight
        jax.random.normal(ks[3], (S,), jnp.float32) * 0.1,         # squeeze1 bias
        jax.random.normal(ks[4], (S, E), jnp.float32) * 0.3,       # expand1x1 weight
        jax.random.normal(ks[5], (E,), jnp.float32) * 0.1,         # expand1x1 bias
        jax.random.normal(ks[6], (2, 2, S, E), jnp.float32) * 0.3,  # expand2x2 [kh,kw,s,e]
        jax.random.normal(ks[7], (E,), jnp.float32) * 0.1,         # expand2x2 bias
    )

    out = jax.jit(transfire_forward)(x, concat, params)
    out = jax.block_until_ready(out)
    assert out.shape == (N, 2 * E + Cc, Hc, Wc), out.shape

    ref = reference_forward(x, concat, params)
    np.testing.assert_allclose(np.asarray(out), np.asarray(ref),
                               rtol=1e-4, atol=1e-4)
    print("KERNEL_OK")
</pallas_src>

<mosaic_0001>
module attributes {stable_mosaic.version = 11 : i64} {
  func.func private @main(%arg0: i32) attributes {dimension_semantics = [#tpu.dimension_semantics<core_parallel>], iteration_bounds = array<i64: 2>, tpu.core_type = #tpu.core_type<sc_scalar_subcore>, window_params = []} {
    return
  }
}

module attributes {stable_mosaic.version = 11 : i64} {
  func.func private @main(%arg0: i32) attributes {dimension_semantics = [#tpu.dimension_semantics<core_parallel>], iteration_bounds = array<i64: 2>, tpu.core_type = #tpu.core_type<sc_scalar_subcore>, window_params = []} {
    return
  }
}

module attributes {stable_mosaic.version = 11 : i64} {
  func.func @kernel(%arg0: i32, %arg1: memref<16x32xf32, #tpu.memory_space<vmem>>, %arg2: memref<32x128xf32, #tpu.memory_space<vmem>>, %arg3: memref<96x16xf32, #tpu.memory_space<vmem>>, %arg4: memref<1x128xf32, #tpu.memory_space<vmem>>, %arg5: memref<128x128xf32, #tpu.memory_space<vmem>>, %arg6: memref<1x128xf32, #tpu.memory_space<vmem>>, %arg7: memref<256x128xf32, #tpu.memory_space<vmem>>, %arg8: memref<1x128xf32, #tpu.memory_space<vmem>>, %arg9: memref<32x32xf32, #tpu.memory_space<vmem>>, %arg10: memref<128x128xf32, #tpu.memory_space<vmem>>, %arg11: memref<32x32xf32, #tpu.memory_space<vmem>>, %arg12: memref<128x128xf32, #tpu.memory_space<vmem>>, %arg13: memref<32x128xf32, #tpu.memory_space<vmem>>, %arg14: memref<32x128xf32, #tpu.memory_space<vmem>>) attributes {dimension_semantics = [#tpu.dimension_semantics<arbitrary>], iteration_bounds = array<i64: 1>, scalar_prefetch = 0 : i64, scratch_operands = 0 : i64, tpu.core_type = #tpu.core_type<tc>, window_params = [{pipeline_mode = #tpu.pipeline_mode<synchronous>, transform_indices = @transform_0, window_bounds = array<i64: 16, 32>}, {pipeline_mode = #tpu.pipeline_mode<synchronous>, transform_indices = @transform_1, window_bounds = array<i64: 32, 128>}, {pipeline_mode = #tpu.pipeline_mode<synchronous>, transform_indices = @transform_2, window_bounds = array<i64: 96, 16>}, {pipeline_mode = #tpu.pipeline_mode<synchronous>, transform_indices = @transform_3, window_bounds = array<i64: 1, 128>}, {pipeline_mode = #tpu.pipeline_mode<synchronous>, transform_indices = @transform_4, window_bounds = array<i64: 128, 128>}, {pipeline_mode = #tpu.pipeline_mode<synchronous>, transform_indices = @transform_5, window_bounds = array<i64: 1, 128>}, {pipeline_mode = #tpu.pipeline_mode<synchronous>, transform_indices = @transform_6, window_bounds = array<i64: 256, 128>}, {pipeline_mode = #tpu.pipeline_mode<synchronous>, transform_indices = @transform_7, window_bounds = array<i64: 1, 128>}, {pipeline_mode = #tpu.pipeline_mode<synchronous>, transform_indices = @transform_8, window_bounds = array<i64: 32, 32>}, {pipeline_mode = #tpu.pipeline_mode<synchronous>, transform_indices = @transform_9, window_bounds = array<i64: 128, 128>}, {pipeline_mode = #tpu.pipeline_mode<synchronous>, transform_indices = @transform_10, window_bounds = array<i64: 32, 32>}, {pipeline_mode = #tpu.pipeline_mode<synchronous>, transform_indices = @transform_11, window_bounds = array<i64: 128, 128>}, {pipeline_mode = #tpu.pipeline_mode<synchronous>, transform_indices = @transform_12, window_bounds = array<i64: 32, 128>}, {pipeline_mode = #tpu.pipeline_mode<synchronous>, transform_indices = @transform_13, window_bounds = array<i64: 32, 128>}]} {
    %c0 = arith.constant 0 : index
    %c0_0 = arith.constant 0 : index
    %0 = vector.load %arg1[%c0, %c0_0] : memref<16x32xf32, #tpu.memory_space<vmem>>, vector<16x32xf32>
    %c0_1 = arith.constant 0 : index
    %c0_2 = arith.constant 0 : index
    %1 = vector.load %arg2[%c0_1, %c0_2] : memref<32x128xf32, #tpu.memory_space<vmem>>, vector<32x128xf32>
    %cst = arith.constant dense<0.000000e+00> : vector<16x128xf32>
    %2 = tpu.matmul %0, %1, %cst {dimension_numbers = #tpu.dot_dimension_numbers<[1], [0], [0], [1], [0, 0, 1, 1], [], []>} : vector<16x32xf32>, vector<32x128xf32>, vector<16x128xf32> -> vector<16x128xf32>
    %c0_3 = arith.constant 0 : index
    %c0_4 = arith.constant 0 : index
    %3 = vector.load %arg3[%c0_3, %c0_4] : memref<96x16xf32, #tpu.memory_space<vmem>>, vector<96x16xf32>
    %cst_5 = arith.constant dense<0.000000e+00> : vector<96x128xf32>
    %4 = tpu.matmul %3, %2, %cst_5 {dimension_numbers = #tpu.dot_dimension_numbers<[1], [0], [0], [1], [0, 0, 1, 1], [], []>} : vector<96x16xf32>, vector<16x128xf32>, vector<96x128xf32> -> vector<96x128xf32>
    %c0_6 = arith.constant 0 : index
    %c0_7 = arith.constant 0 : index
    %5 = vector.load %arg4[%c0_6, %c0_7] : memref<1x128xf32, #tpu.memory_space<vmem>>, vector<1x128xf32>
    %6 = vector.broadcast %5 : vector<1x128xf32> to vector<96x128xf32>
    %7 = arith.addf %4, %6 : vector<96x128xf32>
    %cst_8 = arith.constant 2.000000e-01 : f32
    %8 = vector.broadcast %cst_8 : f32 to vector<96x128xf32>
    %9 = arith.mulf %8, %7 : vector<96x128xf32>
    %10 = arith.maximumf %7, %9 : vector<96x128xf32>
    %11 = vector.extract_strided_slice %10 {offsets = [0, 0], sizes = [32, 128], strides = [1, 1]} : vector<96x128xf32> to vector<32x128xf32>
    %12 = vector.extract_strided_slice %10 {offsets = [32, 0], sizes = [32, 128], strides = [1, 1]} : vector<96x128xf32> to vector<32x128xf32>
    %13 = vector.extract_strided_slice %10 {offsets = [64, 0], sizes = [32, 128], strides = [1, 1]} : vector<96x128xf32> to vector<32x128xf32>
    %14 = tpu.concatenate %12, %13 in 1 : vector<32x128xf32>, vector<32x128xf32> -> vector<32x256xf32>
    %c0_9 = arith.constant 0 : index
    %c0_10 = arith.constant 0 : index
    %15 = vector.load %arg5[%c0_9, %c0_10] : memref<128x128xf32, #tpu.memory_space<vmem>>, vector<128x128xf32>
    %cst_11 = arith.constant dense<0.000000e+00> : vector<32x128xf32>
    %16 = tpu.matmul %11, %15, %cst_11 {dimension_numbers = #tpu.dot_dimension_numbers<[1], [0], [0], [1], [0, 0, 1, 1], [], []>} : vector<32x128xf32>, vector<128x128xf32>, vector<32x128xf32> -> vector<32x128xf32>
    %c0_12 = arith.constant 0 : index
    %c0_13 = arith.constant 0 : index
    %17 = vector.load %arg6[%c0_12, %c0_13] : memref<1x128xf32, #tpu.memory_space<vmem>>, vector<1x128xf32>
    %18 = vector.broadcast %17 : vector<1x128xf32> to vector<32x128xf32>
    %19 = arith.addf %16, %18 : vector<32x128xf32>
    %cst_14 = arith.constant 2.000000e-01 : f32
    %20 = vector.broadcast %cst_14 : f32 to vector<32x128xf32>
    %21 = arith.mulf %20, %19 : vector<32x128xf32>
    %22 = arith.maximumf %19, %21 : vector<32x128xf32>
    %c0_15 = arith.constant 0 : index
    %c0_16 = arith.constant 0 : index
    %23 = vector.load %arg7[%c0_15, %c0_16] : memref<256x128xf32, #tpu.memory_space<vmem>>, vector<256x128xf32>
    %cst_17 = arith.constant dense<0.000000e+00> : vector<32x128xf32>
    %24 = tpu.matmul %14, %23, %cst_17 {dimension_numbers = #tpu.dot_dimension_numbers<[1], [0], [0], [1], [0, 0, 1, 1], [], []>} : vector<32x256xf32>, vector<256x128xf32>, vector<32x128xf32> -> vector<32x128xf32>
    %c0_18 = arith.constant 0 : index
    %c0_19 = arith.constant 0 : index
    %25 = vector.load %arg8[%c0_18, %c0_19] : memref<1x128xf32, #tpu.memory_space<vmem>>, vector<1x128xf32>
    %26 = vector.broadcast %25 : vector<1x128xf32> to vector<32x128xf32>
    %27 = arith.addf %24, %26 : vector<32x128xf32>
    %cst_20 = arith.constant 2.000000e-01 : f32
    %28 = vector.broadcast %cst_20 : f32 to vector<32x128xf32>
    %29 = arith.mulf %28, %27 : vector<32x128xf32>
    %30 = arith.maximumf %27, %29 : vector<32x128xf32>
    %c0_21 = arith.constant 0 : index
    %c0_22 = arith.constant 0 : index
    %31 = vector.load %arg9[%c0_21, %c0_22] : memref<32x32xf32, #tpu.memory_space<vmem>>, vector<32x32xf32>
    %cst_23 = arith.constant dense<0.000000e+00> : vector<32x128xf32>
    %32 = tpu.matmul %31, %22, %cst_23 {dimension_numbers = #tpu.dot_dimension_numbers<[1], [0], [0], [1], [0, 0, 1, 1], [], []>} : vector<32x32xf32>, vector<32x128xf32>, vector<32x128xf32> -> vector<32x128xf32>
    %c0_24 = arith.constant 0 : index
    %c0_25 = arith.constant 0 : index
    %33 = vector.load %arg10[%c0_24, %c0_25] : memref<128x128xf32, #tpu.memory_space<vmem>>, vector<128x128xf32>
    %cst_26 = arith.constant dense<0.000000e+00> : vector<32x128xf32>
    %34 = tpu.matmul %32, %33, %cst_26 {dimension_numbers = #tpu.dot_dimension_numbers<[1], [0], [0], [1], [0, 0, 1, 1], [], []>} : vector<32x128xf32>, vector<128x128xf32>, vector<32x128xf32> -> vector<32x128xf32>
    %c0_27 = arith.constant 0 : index
    %c0_28 = arith.constant 0 : index
    %35 = vector.load %arg13[%c0_27, %c0_28] : memref<32x128xf32, #tpu.memory_space<vmem>>, vector<32x128xf32>
    tpu.vector_store %arg13[%c0_27, %c0_28], %34 {strides = array<i32>} : memref<32x128xf32, #tpu.memory_space<vmem>>, vector<32x128xf32>,
    %c0_29 = arith.constant 0 : index
    %c0_30 = arith.constant 0 : index
    %36 = vector.load %arg11[%c0_29, %c0_30] : memref<32x32xf32, #tpu.memory_space<vmem>>, vector<32x32xf32>
    %cst_31 = arith.constant dense<0.000000e+00> : vector<32x128xf32>
    %37 = tpu.matmul %36, %30, %cst_31 {dimension_numbers = #tpu.dot_dimension_numbers<[1], [0], [0], [1], [0, 0, 1, 1], [], []>} : vector<32x32xf32>, vector<32x128xf32>, vector<32x128xf32> -> vector<32x128xf32>
    %c0_32 = arith.constant 0 : index
    %c0_33 = arith.constant 0 : index
    %38 = vector.load %arg12[%c0_32, %c0_33] : memref<128x128xf32, #tpu.memory_space<vmem>>, vector<128x128xf32>
    %cst_34 = arith.constant dense<0.000000e+00> : vector<32x128xf32>
    %39 = tpu.matmul %37, %38, %cst_34 {dimension_numbers = #tpu.dot_dimension_numbers<[1], [0], [0], [1], [0, 0, 1, 1], [], []>} : vector<32x128xf32>, vector<128x128xf32>, vector<32x128xf32> -> vector<32x128xf32>
    %c0_35 = arith.constant 0 : index
    %c0_36 = arith.constant 0 : index
    %40 = vector.load %arg14[%c0_35, %c0_36] : memref<32x128xf32, #tpu.memory_space<vmem>>, vector<32x128xf32>
    tpu.vector_store %arg14[%c0_35, %c0_36], %39 {strides = array<i32>} : memref<32x128xf32, #tpu.memory_space<vmem>>, vector<32x128xf32>,
    return
  }
  func.func @transform_0(%arg0: i32) -> (i32, i32) {
    %c0_i32 = arith.constant 0 : i32
    %c0_i32_0 = arith.constant 0 : i32
    %c0_i32_1 = arith.constant 0 : i32
    return %c0_i32, %c0_i32_0 : i32, i32
  }
  func.func @transform_1(%arg0: i32) -> (i32, i32) {
    %c0_i32 = arith.constant 0 : i32
    %c0_i32_0 = arith.constant 0 : i32
    %c0_i32_1 = arith.constant 0 : i32
    return %c0_i32, %c0_i32_0 : i32, i32
  }
  func.func @transform_2(%arg0: i32) -> (i32, i32) {
    %c0_i32 = arith.constant 0 : i32
    %c0_i32_0 = arith.constant 0 : i32
    %c0_i32_1 = arith.constant 0 : i32
    return %c0_i32, %c0_i32_0 : i32, i32
  }
  func.func @transform_3(%arg0: i32) -> (i32, i32) {
    %c0_i32 = arith.constant 0 : i32
    %c0_i32_0 = arith.constant 0 : i32
    %c0_i32_1 = arith.constant 0 : i32
    return %c0_i32, %c0_i32_0 : i32, i32
  }
  func.func @transform_4(%arg0: i32) -> (i32, i32) {
    %c0_i32 = arith.constant 0 : i32
    %c0_i32_0 = arith.constant 0 : i32
    %c0_i32_1 = arith.constant 0 : i32
    return %c0_i32, %c0_i32_0 : i32, i32
  }
  func.func @transform_5(%arg0: i32) -> (i32, i32) {
    %c0_i32 = arith.constant 0 : i32
    %c0_i32_0 = arith.constant 0 : i32
    %c0_i32_1 = arith.constant 0 : i32
    return %c0_i32, %c0_i32_0 : i32, i32
  }
  func.func @transform_6(%arg0: i32) -> (i32, i32) {
    %c0_i32 = arith.constant 0 : i32
    %c0_i32_0 = arith.constant 0 : i32
    %c0_i32_1 = arith.constant 0 : i32
    return %c0_i32, %c0_i32_0 : i32, i32
  }
  func.func @transform_7(%arg0: i32) -> (i32, i32) {
    %c0_i32 = arith.constant 0 : i32
    %c0_i32_0 = arith.constant 0 : i32
    %c0_i32_1 = arith.constant 0 : i32
    return %c0_i32, %c0_i32_0 : i32, i32
  }
  func.func @transform_8(%arg0: i32) -> (i32, i32) {
    %c0_i32 = arith.constant 0 : i32
    %c0_i32_0 = arith.constant 0 : i32
    %c0_i32_1 = arith.constant 0 : i32
    return %c0_i32, %c0_i32_0 : i32, i32
  }
  func.func @transform_9(%arg0: i32) -> (i32, i32) {
    %c0_i32 = arith.constant 0 : i32
    %c0_i32_0 = arith.constant 0 : i32
    %c0_i32_1 = arith.constant 0 : i32
    return %c0_i32, %c0_i32_0 : i32, i32
  }
  func.func @transform_10(%arg0: i32) -> (i32, i32) {
    %c0_i32 = arith.constant 0 : i32
    %c0_i32_0 = arith.constant 0 : i32
    %c0_i32_1 = arith.constant 0 : i32
    return %c0_i32, %c0_i32_0 : i32, i32
  }
  func.func @transform_11(%arg0: i32) -> (i32, i32) {
    %c0_i32 = arith.constant 0 : i32
    %c0_i32_0 = arith.constant 0 : i32
    %c0_i32_1 = arith.constant 0 : i32
    return %c0_i32, %c0_i32_0 : i32, i32
  }
  func.func @transform_12(%arg0: i32) -> (i32, i32) {
    %c0_i32 = arith.constant 0 : i32
    %c0_i32_0 = arith.constant 0 : i32
    %c0_i32_1 = arith.constant 0 : i32
    return %c0_i32, %c0_i32_0 : i32, i32
  }
  func.func @transform_13(%arg0: i32) -> (i32, i32) {
    %c0_i32 = arith.constant 0 : i32
    %c0_i32_0 = arith.constant 0 : i32
    %c0_i32_1 = arith.constant 0 : i32
    return %c0_i32, %c0_i32_0 : i32, i32
  }
}

</mosaic_0001>

<bundles_post_ra>
// kernel: tile.23
= control target key start
LH: loop header
LB: loop body
LE: loop exit
PB: predicated region body
PF: predicated region fallthrough
CT: control target
= control target key end

     0   :  { %s28_s0 = inlined_call_operand.vmem [shape: f32[8], index: 0, kind: input, shape index: {}]   ;;  %s29_s1 = inlined_call_operand.vmem [shape: f32[15,8], index: 1, kind: output, shape index: {}]  }
   0x1   :  { %v4_v0 = vld [vmem:[%s28_s0] ss:$0 sm:$0xff] }
   0x2   :  { %5 = vst [vmem:[%s29_s1] sm:$0xff] %v4_v0  ;;  %8 = vst [vmem:[%s29_s1 + $0x8] sm:$0xff] %v4_v0 }

// kernel: tile.24
= control target key start
LH: loop header
LB: loop body
LE: loop exit
PB: predicated region body
PF: predicated region fallthrough
CT: control target
= control target key end

     0   :  { %s125_s10 = smov 112   ;;  %s126_s11 = smov 96   ;;  %vm3_vm0 = vcmask 64512   ;;  %vm9_vm1 = vcmask 982912   ;;  %vm15_vm2 = vcmask 917312   ;;  %vm21_vm3 = vcmask 851712   ;;  %s197_s0 = inlined_call_operand.vmem [shape: f32[15,8], index: 0, kind: input, shape index: {}]   ;;  %s198_s1 = inlined_call_operand.vmem [shape: f32[1,120], index: 1, kind: output, shape index: {}]  }
   0x1   :  { %v97_v0 = vld [vmem:[%s197_s0 + $0xe] sm:$0x1]   ;;  %v99_v1 = vld [vmem:[%s197_s0 + $0xc] sm:$0x1]   ;;  %v98_v2 = vld [vmem:[%s197_s0 + $0xd] sm:$0x1]  }
   0x2   :  { %7 = vrot.lane.b32.xlu0 %v97_v0, %s125_s10  ;;  %19 = vrot.lane.b32.xlu1 %v99_v1, %s126_s11  ;;  %v100_v3 = vld [vmem:[%s197_s0 + $0xb] sm:$0x1]   ;;  %s127_s16 = smov 104   ;;  %s128_s17 = smov 88   ;;  %v101_v4 = vld [vmem:[%s197_s0 + $0xa] sm:$0x1]  }
   0x3   :  { %v102_v5 = vld [vmem:[%s197_s0 + $0x9] sm:$0x1]   ;;  %v2_v6 = vld [vmem:[%s197_s0] sm:$0x1]   ;;  %s129_s24 = smov 80   ;;  %s130_s25 = smov 72  }
   0x4   :  { %4 = vst.msk [vmem:[#allocation0] sm:$0x1] %vm3_vm0, %v2_v6   ;;  %v103_v7 = vld [vmem:[%s197_s0 + $0x8] sm:$0x1]   ;;  %v104_v8 = vld [vmem:[%s197_s0 + $0x7] sm:$0x1]  }
   0x5   :  { %s131_s30 = smov 64   ;;  %s132_s2 = smov 56   ;;  %v105_v9 = vld [vmem:[%s197_s0 + $0x6] sm:$0x1]   ;;  %v106_v10 = vld [vmem:[%s197_s0 + $0x5] sm:$0x1]  }
   0x6   :  { %13 = vrot.lane.b32.xlu0 %v98_v2, %s127_s16  ;;  %25 = vrot.lane.b32.xlu1 %v100_v3, %s128_s17  ;;  %s133_s7 = smov 48   ;;  %s134_s8 = smov 40   ;;  %v107_v11 = vld [vmem:[%s197_s0 + $0x4] sm:$0x1]   ;;  %v108_v12 = vld [vmem:[%s197_s0 + $0x3] sm:$0x1]  }
   0x7   :  { %s135_s13 = smov 32   ;;  %s136_s14 = smov 24   ;;  %v109_v13 = vld [vmem:[%s197_s0 + $0x2] sm:$0x1]   ;;  %v110_v14 = vld [vmem:[%s197_s0 + $0x1] sm:$0x1]  }
   0x8   :  { %s137_s0 = smov 16   ;;  %s138_s19 = smov 8   ;;  %vm27_vm4 = vcmask 786112   ;;  %vm33_vm5 = vcmask 720512   ;;  %vm39_vm6 = vcmask 654912   ;;  %vm45_vm7 = vcmask 589312  }
   0x9   :  { %vm51_vm8 = vcmask 523712   ;;  %vm57_vm9 = vcmask 458112   ;;  %vm63_vm10 = vcmask 392512   ;;  %vm69_vm11 = vcmask 326912  }
   0xa   :  { %31 = vrot.lane.b32.xlu0 %v101_v4, %s129_s24  ;;  %37 = vrot.lane.b32.xlu1 %v102_v5, %s130_s25  ;;  %vm75_vm12 = vcmask 261312   ;;  %vm81_vm13 = vcmask 195712   ;;  %vm87_vm14 = vcmask 130112  }
   0xe   :  { %43 = vrot.lane.b32.xlu0 %v103_v7, %s131_s30  ;;  %49 = vrot.lane.b32.xlu1 %v104_v8, %s132_s2 }
  0x12   :  { %55 = vrot.lane.b32.xlu0 %v105_v9, %s133_s7  ;;  %61 = vrot.lane.b32.xlu1 %v106_v10, %s134_s8 }
  0x16   :  { %67 = vrot.lane.b32.xlu0 %v107_v11, %s135_s13  ;;  %73 = vrot.lane.b32.xlu1 %v108_v12, %s136_s14 }
  0x1a   :  { %79 = vrot.lane.b32.xlu0 %v109_v13, %s137_s0  ;;  %85 = vrot.lane.b32.xlu1 %v110_v14, %s138_s19 }
  0x74   :  { %v8_v15 = vpop.permute.xlu0 %7   ;;  %v20_v16 = vpop.permute.xlu1 %19  }
  0x75   :  { %10 = vst.msk [vmem:[#allocation0] sm:$0x1] %vm9_vm1, %v8_v15  }
  0x78   :  { %v14_v17 = vpop.permute.xlu0 %13   ;;  %v26_v18 = vpop.permute.xlu1 %25  }
  0x79   :  { %16 = vst.msk [vmem:[#allocation0] sm:$0x1] %vm15_vm2, %v14_v17  }
  0x7a   :  { %22 = vst.msk [vmem:[#allocation0] sm:$0x1] %vm21_vm3, %v20_v16  }
  0x7b   :  { %28 = vst.msk [vmem:[#allocation0] sm:$0x1] %vm27_vm4, %v26_v18  }
  0x7c   :  { %v32_v19 = vpop.permute.xlu0 %31   ;;  %v38_v20 = vpop.permute.xlu1 %37  }
  0x7d   :  { %34 = vst.msk [vmem:[#allocation0] sm:$0x1] %vm33_vm5, %v32_v19  }
  0x7e   :  { %40 = vst.msk [vmem:[#allocation0] sm:$0x1] %vm39_vm6, %v38_v20  }
  0x80   :  { %v44_v21 = vpop.permute.xlu0 %43   ;;  %v50_v22 = vpop.permute.xlu1 %49  }
  0x81   :  { %46 = vst.msk [vmem:[#allocation0] sm:$0x1] %vm45_vm7, %v44_v21  }
  0x82   :  { %52 = vst.msk [vmem:[#allocation0] sm:$0x1] %vm51_vm8, %v50_v22  }
  0x84   :  { %v56_v23 = vpop.permute.xlu0 %55   ;;  %v62_v24 = vpop.permute.xlu1 %61  }
  0x85   :  { %58 = vst.msk [vmem:[#allocation0] sm:$0x1] %vm57_vm9, %v56_v23  }
  0x86   :  { %64 = vst.msk [vmem:[#allocation0] sm:$0x1] %vm63_vm10, %v62_v24  }
  0x88   :  { %v68_v25 = vpop.permute.xlu0 %67   ;;  %v74_v26 = vpop.permute.xlu1 %73  }
  0x89   :  { %70 = vst.msk [vmem:[#allocation0] sm:$0x1] %vm69_vm11, %v68_v25  }
  0x8a   :  { %76 = vst.msk [vmem:[#allocation0] sm:$0x1] %vm75_vm12, %v74_v26  }
  0x8c   :  { %v80_v27 = vpop.permute.xlu0 %79   ;;  %v86_v28 = vpop.permute.xlu1 %85  }
  0x8d   :  { %82 = vst.msk [vmem:[#allocation0] sm:$0x1] %vm81_vm13, %v80_v27  }
  0x8e   :  { %88 = vst.msk [vmem:[#allocation0] sm:$0x1] %vm87_vm14, %v86_v28  }
  0x95   :  { %v93_v29 = vld [vmem:[#allocation0] sm:$0x1] }
  0x96   :  { %96 = vst [vmem:[%s198_s1] sm:$0x1] %v93_v29 }

// kernel: tile.28
= control target key start
LH: loop header
LB: loop body
LE: loop exit
PB: predicated region body
PF: predicated region fallthrough
CT: control target
= control target key end

     0   :  { %s28_s0 = inlined_call_operand.vmem [shape: f32[8], index: 0, kind: input, shape index: {}]   ;;  %s29_s1 = inlined_call_operand.vmem [shape: f32[14,8], index: 1, kind: output, shape index: {}]  }
   0x1   :  { %v4_v0 = vld [vmem:[%s28_s0] ss:$0 sm:$0xff] }
   0x2   :  { %5 = vst [vmem:[%s29_s1] sm:$0xff] %v4_v0  ;;  %8 = vst [vmem:[%s29_s1 + $0x8] sm:$0xff] %v4_v0 }

// kernel: tile.29
= control target key start
LH: loop header
LB: loop body
LE: loop exit
PB: predicated region body
PF: predicated region fallthrough
CT: control target
= control target key end

     0   :  { %s117_s10 = smov 104   ;;  %s118_s11 = smov 88   ;;  %vm3_vm0 = vcmask 64512   ;;  %vm9_vm1 = vcmask 917312   ;;  %vm15_vm2 = vcmask 851712   ;;  %vm21_vm3 = vcmask 786112   ;;  %s185_s0 = inlined_call_operand.vmem [shape: f32[14,8], index: 0, kind: input, shape index: {}]   ;;  %s186_s1 = inlined_call_operand.vmem [shape: f32[1,112], index: 1, kind: output, shape index: {}]  }
   0x1   :  { %v91_v0 = vld [vmem:[%s185_s0 + $0xd] sm:$0x1]   ;;  %v93_v1 = vld [vmem:[%s185_s0 + $0xb] sm:$0x1]   ;;  %v92_v2 = vld [vmem:[%s185_s0 + $0xc] sm:$0x1]  }
   0x2   :  { %7 = vrot.lane.b32.xlu0 %v91_v0, %s117_s10  ;;  %19 = vrot.lane.b32.xlu1 %v93_v1, %s118_s11  ;;  %v94_v3 = vld [vmem:[%s185_s0 + $0xa] sm:$0x1]   ;;  %s119_s16 = smov 96   ;;  %s120_s17 = smov 80   ;;  %v95_v4 = vld [vmem:[%s185_s0 + $0x9] sm:$0x1]  }
   0x3   :  { %v96_v5 = vld [vmem:[%s185_s0 + $0x8] sm:$0x1]   ;;  %v2_v6 = vld [vmem:[%s185_s0] sm:$0x1]   ;;  %s121_s24 = smov 72   ;;  %s122_s25 = smov 64  }
   0x4   :  { %4 = vst.msk [vmem:[#allocation0] sm:$0x1] %vm3_vm0, %v2_v6   ;;  %v97_v7 = vld [vmem:[%s185_s0 + $0x7] sm:$0x1]   ;;  %v98_v8 = vld [vmem:[%s185_s0 + $0x6] sm:$0x1]  }
   0x5   :  { %s123_s30 = smov 56   ;;  %s124_s2 = smov 48   ;;  %v99_v9 = vld [vmem:[%s185_s0 + $0x5] sm:$0x1]   ;;  %v100_v10 = vld [vmem:[%s185_s0 + $0x4] sm:$0x1]  }
   0x6   :  { %13 = vrot.lane.b32.xlu0 %v92_v2, %s119_s16  ;;  %25 = vrot.lane.b32.xlu1 %v94_v3, %s120_s17  ;;  %s125_s7 = smov 40   ;;  %s126_s8 = smov 32   ;;  %v101_v11 = vld [vmem:[%s185_s0 + $0x3] sm:$0x1]   ;;  %v102_v12 = vld [vmem:[%s185_s0 + $0x2] sm:$0x1]  }
   0x7   :  { %s127_s13 = smov 24   ;;  %s128_s14 = smov 16   ;;  %v103_v13 = vld [vmem:[%s185_s0 + $0x1] sm:$0x1]   ;;  %vm27_vm4 = vcmask 720512   ;;  %vm33_vm5 = vcmask 654912  }
   0x8   :  { %s129_s0 = smov 8   ;;  %vm39_vm6 = vcmask 589312   ;;  %vm45_vm7 = vcmask 523712   ;;  %vm51_vm8 = vcmask 458112   ;;  %vm57_vm9 = vcmask 392512  }
   0x9   :  { %vm63_vm10 = vcmask 326912   ;;  %vm69_vm11 = vcmask 261312   ;;  %vm75_vm12 = vcmask 195712   ;;  %vm81_vm13 = vcmask 130112  }
   0xa   :  { %31 = vrot.lane.b32.xlu0 %v95_v4, %s121_s24  ;;  %37 = vrot.lane.b32.xlu1 %v96_v5, %s122_s25 }
   0xe   :  { %43 = vrot.lane.b32.xlu0 %v97_v7, %s123_s30  ;;  %49 = vrot.lane.b32.xlu1 %v98_v8, %s124_s2 }
  0x12   :  { %55 = vrot.lane.b32.xlu0 %v99_v9, %s125_s7  ;;  %61 = vrot.lane.b32.xlu1 %v100_v10, %s126_s8 }
  0x16   :  { %67 = vrot.lane.b32.xlu0 %v101_v11, %s127_s13  ;;  %73 = vrot.lane.b32.xlu1 %v102_v12, %s128_s14 }
  0x1a   :  { %79 = vrot.lane.b32.xlu0 %v103_v13, %s129_s0 }
  0x74   :  { %v8_v14 = vpop.permute.xlu0 %7   ;;  %v20_v15 = vpop.permute.xlu1 %19  }
  0x75   :  { %10 = vst.msk [vmem:[#allocation0] sm:$0x1] %vm9_vm1, %v8_v14  }
  0x78   :  { %v14_v16 = vpop.permute.xlu0 %13   ;;  %v26_v17 = vpop.permute.xlu1 %25  }
  0x79   :  { %16 = vst.msk [vmem:[#allocation0] sm:$0x1] %vm15_vm2, %v14_v16  }
  0x7a   :  { %22 = vst.msk [vmem:[#allocation0] sm:$0x1] %vm21_vm3, %v20_v15  }
  0x7b   :  { %28 = vst.msk [vmem:[#allocation0] sm:$0x1] %vm27_vm4, %v26_v17  }
  0x7c   :  { %v32_v18 = vpop.permute.xlu0 %31   ;;  %v38_v19 = vpop.permute.xlu1 %37  }
  0x7d   :  { %34 = vst.msk [vmem:[#allocation0] sm:$0x1] %vm33_vm5, %v32_v18  }
  0x7e   :  { %40 = vst.msk [vmem:[#allocation0] sm:$0x1] %vm39_vm6, %v38_v19  }
  0x80   :  { %v44_v20 = vpop.permute.xlu0 %43   ;;  %v50_v21 = vpop.permute.xlu1 %49  }
  0x81   :  { %46 = vst.msk [vmem:[#allocation0] sm:$0x1] %vm45_vm7, %v44_v20  }
  0x82   :  { %52 = vst.msk [vmem:[#allocation0] sm:$0x1] %vm51_vm8, %v50_v21  }
  0x84   :  { %v56_v22 = vpop.permute.xlu0 %55   ;;  %v62_v23 = vpop.permute.xlu1 %61  }
  0x85   :  { %58 = vst.msk [vmem:[#allocation0] sm:$0x1] %vm57_vm9, %v56_v22  }
  0x86   :  { %64 = vst.msk [vmem:[#allocation0] sm:$0x1] %vm63_vm10, %v62_v23  }
  0x88   :  { %v68_v24 = vpop.permute.xlu0 %67   ;;  %v74_v25 = vpop.permute.xlu1 %73  }
  0x89   :  { %70 = vst.msk [vmem:[#allocation0] sm:$0x1] %vm69_vm11, %v68_v24  }
  0x8a   :  { %76 = vst.msk [vmem:[#allocation0] sm:$0x1] %vm75_vm12, %v74_v25  }
  0x8c   :  { %v80_v26 = vpop.permute.xlu0 %79  }
  0x8d   :  { %82 = vst.msk [vmem:[#allocation0] sm:$0x1] %vm81_vm13, %v80_v26  }
  0x94   :  { %v87_v27 = vld [vmem:[#allocation0] sm:$0x1] }
  0x95   :  { %90 = vst [vmem:[%s186_s1] sm:$0x1] %v87_v27 }

// kernel: transfire_forward.1
= control target key start
LH: loop header
LB: loop body
LE: loop exit
PB: predicated region body
PF: predicated region fallthrough
CT: control target
= control target key end

     0   :  { %vm49_vm0 = vcmask 261120   ;;  %vm150_vm1 = vcmask 130048   ;;  %s1787_s1 = inlined_call_operand.vmem [shape: f32[32,128], index: 1, kind: input, shape index: {}]   ;;  %s1788_s0 = inlined_call_operand.vmem [shape: f32[16,32], index: 0, kind: input, shape index: {}]   ;;  %s1789_s2 = inlined_call_operand.vmem [shape: f32[96,16], index: 2, kind: input, shape index: {}]   ;;  %s1790_s4 = inlined_call_operand.vmem [shape: f32[128,128], index: 4, kind: input, shape index: {}]   ;;  %s1791_s6 = inlined_call_operand.vmem [shape: f32[256,128], index: 6, kind: input, shape index: {}]   ;;  %s1792_s3 = inlined_call_operand.vmem [shape: f32[1,128], index: 3, kind: input, shape index: {}]   ;;  %s1793_s8 = inlined_call_operand.vmem [shape: f32[32,32], index: 8, kind: input, shape index: {}]   ;;  %s1794_s9 = inlined_call_operand.vmem [shape: f32[128,128], index: 9, kind: input, shape index: {}]   ;;  %s1795_s5 = inlined_call_operand.vmem [shape: f32[1,128], index: 5, kind: input, shape index: {}]   ;;  %s1796_s10 = inlined_call_operand.vmem [shape: f32[32,32], index: 10, kind: input, shape index: {}]   ;;  %s1797_s7 = inlined_call_operand.vmem [shape: f32[1,128], index: 7, kind: input, shape index: {}]   ;;  %s1798_s11 = inlined_call_operand.vmem [shape: f32[128,128], index: 11, kind: input, shape index: {}]   ;;  %s1799_s12 = inlined_call_operand.vmem [shape: f32[32,128], index: 12, kind: output, shape index: {0}]   ;;  %s1800_s13 = inlined_call_operand.vmem [shape: f32[32,128], index: 13, kind: output, shape index: {1}]  }
   0x1   :  { %v48_v0 = vld [vmem:[%s1787_s1 + $0x18] sm:$0xff]  ;;  %v47_v1 = vld [vmem:[%s1787_s1 + $0x10] sm:$0xff]  ;;  %v43_v2 = vld [vmem:[%s1788_s0] sm:$0xff] }
   0x2   :  { %1169 = vmatprep.subr.mxu0 %v48_v0  ;;  %v46_v3 = vld [vmem:[%s1787_s1 + $0x8] sm:$0xff]  ;;  %1177 = vmatprep.mubr.msk.f32.mxu0 %vm49_vm0, %v43_v2  ;;  %v45_v4 = vld [vmem:[%s1787_s1] sm:$0xff]  ;;  %v351_v7 = vld [vmem:[%s1790_s4 + $0x78] sm:$0xff] }
   0x3   :  { %1170 = vmatpush3.msra.mxu0 %v48_v0  ;;  %v44_v5 = vld [vmem:[%s1788_s0 + $0x8] sm:$0xff]  ;;  %v131_v6 = vld [vmem:[%s1789_s2] sm:$0xff]  ;;  %v350_v8 = vld [vmem:[%s1790_s4 + $0x70] sm:$0xff]  ;;  %1202 = vmatprep.subr.mxu1 %v351_v7 }
   0x4   :  { %1171 = vmatprep.subr.mxu0 %v47_v1  ;;  %1203 = vmatpush3.msra.mxu1 %v351_v7  ;;  %v349_v9 = vld [vmem:[%s1790_s4 + $0x68] sm:$0xff]  ;;  %v348_v10 = vld [vmem:[%s1790_s4 + $0x60] sm:$0xff]  ;;  %v347_v11 = vld [vmem:[%s1790_s4 + $0x58] sm:$0xff] }
   0x5   :  { %1172 = vmatpush3.msra.mxu0 %v47_v1  ;;  %1204 = vmatprep.subr.mxu1 %v350_v8  ;;  %v346_v12 = vld [vmem:[%s1790_s4 + $0x50] sm:$0xff]  ;;  %v345_v13 = vld [vmem:[%s1790_s4 + $0x48] sm:$0xff]  ;;  %v344_v14 = vld [vmem:[%s1790_s4 + $0x40] sm:$0xff] }
   0x6   :  { %1173 = vmatprep.subr.mxu0 %v46_v3  ;;  %1205 = vmatpush3.msra.mxu1 %v350_v8  ;;  %v343_v15 = vld [vmem:[%s1790_s4 + $0x38] sm:$0xff]  ;;  %v342_v16 = vld [vmem:[%s1790_s4 + $0x30] sm:$0xff]  ;;  %v341_v17 = vld [vmem:[%s1790_s4 + $0x28] sm:$0xff] }
   0x7   :  { %1174 = vmatpush3.msra.mxu0 %v46_v3  ;;  %1206 = vmatprep.subr.mxu1 %v349_v9  ;;  %v132_v20 = vld [vmem:[%s1789_s2 + $0x8] sm:$0xff]  ;;  %v483_v21 = vld [vmem:[%s1791_s6 + $0xf8] sm:$0xff]  ;;  %v133_v22 = vld [vmem:[%s1789_s2 + $0x10] sm:$0xff] }
   0x8   :  { %1175 = vmatprep.subr.mxu0 %v45_v4  ;;  %1207 = vmatpush3.msra.mxu1 %v349_v9  ;;  %v467_v23 = vld [vmem:[%s1791_s6 + $0x78] sm:$0xff]  ;;  %v482_v24 = vld [vmem:[%s1791_s6 + $0xf0] sm:$0xff]  ;;  %v481_v27 = vld [vmem:[%s1791_s6 + $0xe8] sm:$0xff] }
   0x9   :  { %1176 = vmatpush3.msra.mxu0 %v45_v4  ;;  %1208 = vmatprep.subr.mxu1 %v348_v10  ;;  %v466_v25 = vld [vmem:[%s1791_s6 + $0x70] sm:$0xff]  ;;  %v134_v26 = vld [vmem:[%s1789_s2 + $0x18] sm:$0xff]  ;;  %v135_v28 = vld [vmem:[%s1789_s2 + $0x20] sm:$0xff] }
   0xa   :  { %1178 = vmatmul.mubr.msk.f32.vlgmr.msra.gmra.mxu0 %vm49_vm0, %v44_v5  ;;  %1209 = vmatpush3.msra.mxu1 %v348_v10  ;;  %v465_v29 = vld [vmem:[%s1791_s6 + $0x68] sm:$0xff]  ;;  %v137_v31 = vld [vmem:[%s1789_s2 + $0x30] sm:$0xff]  ;;  %v138_v32 = vld [vmem:[%s1789_s2 + $0x38] sm:$0xff] }
   0xb   :  { %1184 = vmatprep.mubr.msk.f32.mxu0 %vm150_vm1, %v131_v6  ;;  %1210 = vmatprep.subr.mxu1 %v347_v11  ;;  %v136_v30 = vld [vmem:[%s1789_s2 + $0x28] sm:$0xff]  ;;  %v139_v33 = vld [vmem:[%s1789_s2 + $0x40] sm:$0xff]  ;;  %v141_v35 = vld [vmem:[%s1789_s2 + $0x50] sm:$0xff] }
   0xc   :  { %1211 = vmatpush3.msra.mxu1 %v347_v11  ;;  %v140_v34 = vld [vmem:[%s1789_s2 + $0x48] sm:$0xff]  ;;  %v142_v36 = vld [vmem:[%s1789_s2 + $0x58] sm:$0xff]  ;;  %v340_v37 = vld [vmem:[%s1790_s4 + $0x20] sm:$0xff] }
   0xd   :  { %1212 = vmatprep.subr.mxu1 %v346_v12  ;;  %v480_v38 = vld [vmem:[%s1791_s6 + $0xe0] sm:$0xff]  ;;  %v339_v40 = vld [vmem:[%s1790_s4 + $0x18] sm:$0xff]  ;;  %v338_v43 = vld [vmem:[%s1790_s4 + $0x10] sm:$0xff] }
   0xe   :  { %1213 = vmatpush3.msra.mxu1 %v346_v12  ;;  %v464_v39 = vld [vmem:[%s1791_s6 + $0x60] sm:$0xff]  ;;  %v479_v41 = vld [vmem:[%s1791_s6 + $0xd8] sm:$0xff]  ;;  %v478_v44 = vld [vmem:[%s1791_s6 + $0xd0] sm:$0xff] }
   0xf   :  { %1214 = vmatprep.subr.mxu1 %v345_v13  ;;  %v463_v42 = vld [vmem:[%s1791_s6 + $0x58] sm:$0xff]  ;;  %v462_v45 = vld [vmem:[%s1791_s6 + $0x50] sm:$0xff]  ;;  %v337_v46 = vld [vmem:[%s1790_s4 + $0x8] sm:$0xff] }
  0x10   :  { %1215 = vmatpush3.msra.mxu1 %v345_v13  ;;  %v477_v47 = vld [vmem:[%s1791_s6 + $0xc8] sm:$0xff]  ;;  %v336_v49 = vld [vmem:[%s1790_s4] sm:$0xff]  ;;  %v475_v52 = vld [vmem:[%s1791_s6 + $0xb8] sm:$0xff] }
  0x11   :  { %1216 = vmatprep.subr.mxu1 %v344_v14  ;;  %v461_v48 = vld [vmem:[%s1791_s6 + $0x48] sm:$0xff]  ;;  %v476_v50 = vld [vmem:[%s1791_s6 + $0xc0] sm:$0xff]  ;;  %v459_v53 = vld [vmem:[%s1791_s6 + $0x38] sm:$0xff] }
  0x12   :  { %1217 = vmatpush3.msra.mxu1 %v344_v14  ;;  %v460_v51 = vld [vmem:[%s1791_s6 + $0x40] sm:$0xff]  ;;  %v474_v54 = vld [vmem:[%s1791_s6 + $0xb0] sm:$0xff]  ;;  %v473_v56 = vld [vmem:[%s1791_s6 + $0xa8] sm:$0xff] }
  0x13   :  { %1218 = vmatprep.subr.mxu1 %v343_v15  ;;  %v458_v55 = vld [vmem:[%s1791_s6 + $0x30] sm:$0xff]  ;;  %v457_v57 = vld [vmem:[%s1791_s6 + $0x28] sm:$0xff]  ;;  %v472_v58 = vld [vmem:[%s1791_s6 + $0xa0] sm:$0xff] }
  0x14   :  { %1219 = vmatpush3.msra.mxu1 %v343_v15  ;;  %v456_v59 = vld [vmem:[%s1791_s6 + $0x20] sm:$0xff]  ;;  %v471_v60 = vld [vmem:[%s1791_s6 + $0x98] sm:$0xff]  ;;  %v470_v62 = vld [vmem:[%s1791_s6 + $0x90] sm:$0xff] }
  0x15   :  { %1220 = vmatprep.subr.mxu1 %v342_v16  ;;  %v455_v61 = vld [vmem:[%s1791_s6 + $0x18] sm:$0xff]  ;;  %v454_v63 = vld [vmem:[%s1791_s6 + $0x10] sm:$0xff]  ;;  %v469_v0 = vld [vmem:[%s1791_s6 + $0x88] sm:$0xff] }
  0x16   :  { %1221 = vmatpush3.msra.mxu1 %v342_v16  ;;  %v453_v1 = vld [vmem:[%s1791_s6 + $0x8] sm:$0xff]  ;;  %v468_v2 = vld [vmem:[%s1791_s6 + $0x80] sm:$0xff] }
  0x17   :  { %1222 = vmatprep.subr.mxu1 %v341_v17  ;;  %v452_v3 = vld [vmem:[%s1791_s6] sm:$0xff] }
  0x18   :  { %1223 = vmatpush3.msra.mxu1 %v341_v17  ;;  %v1006_v4 = vld [vmem:[%s1792_s3] ss:$0 sm:$0xff] }
  0x19   :  { %1224 = vmatprep.subr.mxu1 %v340_v37 }
  0x1a   :  { %1225 = vmatpush3.msra.mxu1 %v340_v37 }
  0x1b   :  { %1226 = vmatprep.subr.mxu1 %v339_v40 }
  0x1c   :  { %1227 = vmatpush3.msra.mxu1 %v339_v40 }
  0x1d   :  { %1228 = vmatprep.subr.mxu1 %v338_v43 }
  0x1e   :  { %1229 = vmatpush3.msra.mxu1 %v338_v43 }
  0x1f   :  { %1230 = vmatprep.subr.mxu1 %v337_v46 }
  0x20   :  { %1231 = vmatpush3.msra.mxu1 %v337_v46 }
  0x21   :  { %1232 = vmatprep.subr.mxu1 %v336_v49 }
  0x22   :  { %1233 = vmatpush3.msra.mxu1 %v336_v49 }
  0xca   :  { %v1179_v18 = vpop.f32.mrf.mxu0 }
  0xcb   :  { %1180 = vmatprep.subr.mxu0 %v1179_v18 }
  0xcc   :  { %v122_v19 = vpop.f32.mrf.mxu0  ;;  %1181 = vmatpush3.msra.mxu0 %v1179_v18 }
  0xcd   :  { %1182 = vmatprep.subr.mxu0 %v122_v19 }
  0xce   :  { %1183 = vmatpush3.msra.mxu0 %v122_v19 }
  0xcf   :  { %1185 = vmatmul.mubr.msk.f32.vlgmr.msra.gmra.mxu0 %vm150_vm1, %v132_v20  ;;  %1069 = vmatprep.subr.mxu0 %v483_v21 }
  0xd0   :  { %1187 = vmatprep.mubr.msk.f32.mxu0 %vm150_vm1, %v133_v22  ;;  %1070 = vmatpush3.msra.mxu0 %v467_v23 }
  0xd1   :  { %1071 = vmatprep.subr.mxu0 %v482_v24 }
  0xd2   :  { %1072 = vmatpush3.msra.mxu0 %v466_v25 }
  0xd3   :  { %1188 = vmatmul.mubr.msk.f32.gmra.mxu0 %vm150_vm1, %v134_v26  ;;  %1073 = vmatprep.subr.mxu0 %v481_v27 }
  0xd4   :  { %1190 = vmatprep.mubr.msk.f32.mxu0 %vm150_vm1, %v135_v28  ;;  %1074 = vmatpush3.msra.mxu0 %v465_v29 }
  0xd5   :  { %1075 = vmatprep.subr.mxu0 %v480_v38 }
  0xd6   :  { %1076 = vmatpush3.msra.mxu0 %v464_v39 }
  0xd7   :  { %1191 = vmatmul.mubr.msk.f32.gmra.mxu0 %vm150_vm1, %v136_v30  ;;  %1077 = vmatprep.subr.mxu0 %v479_v41 }
  0xd8   :  { %1193 = vmatprep.mubr.msk.f32.mxu0 %vm150_vm1, %v137_v31  ;;  %1078 = vmatpush3.msra.mxu0 %v463_v42 }
  0xd9   :  { %1079 = vmatprep.subr.mxu0 %v478_v44 }
  0xda   :  { %1080 = vmatpush3.msra.mxu0 %v462_v45 }
  0xdb   :  { %1194 = vmatmul.mubr.msk.f32.gmra.mxu0 %vm150_vm1, %v138_v32  ;;  %1081 = vmatprep.subr.mxu0 %v477_v47 }
  0xdc   :  { %1196 = vmatprep.mubr.msk.f32.mxu0 %vm150_vm1, %v139_v33  ;;  %1082 = vmatpush3.msra.mxu0 %v461_v48 }
  0xdd   :  { %1083 = vmatprep.subr.mxu0 %v476_v50 }
  0xde   :  { %1084 = vmatpush3.msra.mxu0 %v460_v51 }
  0xdf   :  { %1197 = vmatmul.mubr.msk.f32.gmra.mxu0 %vm150_vm1, %v140_v34  ;;  %1085 = vmatprep.subr.mxu0 %v475_v52 }
  0xe0   :  { %1199 = vmatprep.mubr.msk.f32.mxu0 %vm150_vm1, %v141_v35  ;;  %1086 = vmatpush3.msra.mxu0 %v459_v53  ;;  %v584_v53 = vld [vmem:[%s1793_s8] sm:$0xff] }
  0xe1   :  { %1087 = vmatprep.subr.mxu0 %v474_v54  ;;  %v700_v54 = vld [vmem:[%s1794_s9 + $0x78] sm:$0xff] }
  0xe2   :  { %1088 = vmatpush3.msra.mxu0 %v458_v55  ;;  %v699_v55 = vld [vmem:[%s1794_s9 + $0x70] sm:$0xff] }
  0xe3   :  { %1200 = vmatmul.mubr.msk.f32.gmra.mxu0 %vm150_vm1, %v142_v36  ;;  %1089 = vmatprep.subr.mxu0 %v473_v56  ;;  %v698_v56 = vld [vmem:[%s1794_s9 + $0x68] sm:$0xff] }
  0xe4   :  { %1090 = vmatpush3.msra.mxu0 %v457_v57  ;;  %v697_v57 = vld [vmem:[%s1794_s9 + $0x60] sm:$0xff] }
  0xe5   :  { %1091 = vmatprep.subr.mxu0 %v472_v58  ;;  %v696_v58 = vld [vmem:[%s1794_s9 + $0x58] sm:$0xff] }
  0xe6   :  { %1092 = vmatpush3.msra.mxu0 %v456_v59  ;;  %v695_v59 = vld [vmem:[%s1794_s9 + $0x50] sm:$0xff] }
  0xe7   :  { %1093 = vmatprep.subr.mxu0 %v471_v60  ;;  %v694_v60 = vld [vmem:[%s1794_s9 + $0x48] sm:$0xff] }
  0xe8   :  { %1094 = vmatpush3.msra.mxu0 %v455_v61  ;;  %v693_v61 = vld [vmem:[%s1794_s9 + $0x40] sm:$0xff] }
  0xe9   :  { %1095 = vmatprep.subr.mxu0 %v470_v62  ;;  %v692_v62 = vld [vmem:[%s1794_s9 + $0x38] sm:$0xff] }
  0xea   :  { %1096 = vmatpush3.msra.mxu0 %v454_v63  ;;  %v691_v63 = vld [vmem:[%s1794_s9 + $0x30] sm:$0xff] }
  0xeb   :  { %1097 = vmatprep.subr.mxu0 %v469_v0  ;;  %v690_v0 = vld [vmem:[%s1794_s9 + $0x28] sm:$0xff] }
  0xec   :  { %1098 = vmatpush3.msra.mxu0 %v453_v1  ;;  %v689_v1 = vld [vmem:[%s1794_s9 + $0x20] sm:$0xff] }
  0xed   :  { %1099 = vmatprep.subr.mxu0 %v468_v2  ;;  %v688_v2 = vld [vmem:[%s1794_s9 + $0x18] sm:$0xff] }
  0xee   :  { %1100 = vmatpush3.msra.mxu0 %v452_v3  ;;  %v687_v3 = vld [vmem:[%s1794_s9 + $0x10] sm:$0xff] }
  0xef   :  { %1254 = vmatprep.subr.mxu0 %v700_v54 }
 0x18f   :  { %v1186_v5 = vpop.f32.mrf.mxu0 }
 0x190   :  { %v259_v6 = vadd.f32 %v1186_v5, %v1006_v4  ;;  %v1019_v5 = vld [vmem:[%s1795_s5] ss:$0 sm:$0xff] }
 0x191   :  { %v253_v7 = vpop.f32.mrf.mxu0 }
 0x192   :  { %v254_v8 = vadd.f32 %v1006_v4, %v253_v7  ;;  %v313_v9 = vmul.f32 0.2, %v259_v6 }
 0x193   :  { %v1189_v10 = vpop.f32.mrf.mxu0 }
 0x194   :  { %v269_v11 = vadd.f32 %v1189_v10, %v1006_v4  ;;  %v312_v12 = vmul.f32 0.2, %v254_v8  ;;  %v325_v16 = vmax.f32 %v259_v6, %v313_v9 }
 0x195   :  { %v263_v13 = vpop.f32.mrf.mxu0 }
 0x196   :  { %v264_v14 = vadd.f32 %v1006_v4, %v263_v13  ;;  %v324_v15 = vmax.f32 %v254_v8, %v312_v12  ;;  %v315_v17 = vmul.f32 0.2, %v269_v11 }
 0x197   :  { %v1192_v18 = vpop.f32.mrf.mxu0 }
 0x198   :  { %v314_v19 = vmul.f32 0.2, %v264_v14  ;;  %1234 = vmatprep.mubr.f32.mxu1 %v324_v15  ;;  %v327_v22 = vmax.f32 %v269_v11, %v315_v17  ;;  %v279_v30 = vadd.f32 %v1192_v18, %v1006_v4 }
 0x199   :  { %v273_v20 = vpop.f32.mrf.mxu0  ;;  %1235 = vmatmul.mubr.f32.vlgmr.msra.gmra.mxu1 %v325_v16 }
 0x19a   :  { %v326_v21 = vmax.f32 %v264_v14, %v314_v19  ;;  %v274_v25 = vadd.f32 %v1006_v4, %v273_v20  ;;  %v317_v38 = vmul.f32 0.2, %v279_v30 }
 0x19b   :  { %v1195_v23 = vpop.f32.mrf.mxu0 }
 0x19c   :  { %1237 = vmatprep.mubr.f32.mxu1 %v326_v21  ;;  %v316_v31 = vmul.f32 0.2, %v274_v25  ;;  %v329_v44 = vmax.f32 %v279_v30, %v317_v38  ;;  %v289_v45 = vadd.f32 %v1195_v23, %v1006_v4  ;;  %v586_v23 = vld [vmem:[%s1793_s8 + $0x10] sm:$0xff] }
 0x19d   :  { %v283_v24 = vpop.f32.mrf.mxu0  ;;  %1238 = vmatmul.mubr.f32.gmra.mxu1 %v327_v22  ;;  %v585_v22 = vld [vmem:[%s1793_s8 + $0x8] sm:$0xff] }
 0x19e   :  { %v328_v39 = vmax.f32 %v274_v25, %v316_v31  ;;  %v284_v40 = vadd.f32 %v1006_v4, %v283_v24  ;;  %v319_v49 = vmul.f32 0.2, %v289_v45  ;;  %1248 = vmatprep.mubr.msk.f32.mxu1 %vm49_vm0, %v584_v53  ;;  %v905_v53 = vld [vmem:[%s1798_s11 + $0x70] sm:$0xff] }
 0x19f   :  { %v1198_v26 = vpop.f32.mrf.mxu0 }
 0x1a0   :  { %v299_v27 = vadd.f32 %v1198_v26, %v1006_v4  ;;  %v318_v46 = vmul.f32 0.2, %v284_v40  ;;  %v331_v52 = vmax.f32 %v289_v45, %v319_v49  ;;  %v587_v26 = vld [vmem:[%s1793_s8 + $0x18] sm:$0xff] }
 0x1a1   :  { %v293_v28 = vpop.f32.mrf.mxu0 }
 0x1a2   :  { %v294_v29 = vadd.f32 %v1006_v4, %v293_v28  ;;  %v321_v33 = vmul.f32 0.2, %v299_v27  ;;  %v330_v50 = vmax.f32 %v284_v40, %v318_v46 }
 0x1a3   :  { %v1201_v32 = vpop.f32.mrf.mxu0 }
 0x1a4   :  { %v320_v34 = vmul.f32 0.2, %v294_v29  ;;  %v333_v41 = vmax.f32 %v299_v27, %v321_v33  ;;  %v309_v42 = vadd.f32 %v1201_v32, %v1006_v4  ;;  %v790_v27 = vld [vmem:[%s1796_s10] sm:$0xff] }
 0x1a5   :  { %v303_v35 = vpop.f32.mrf.mxu0 }
 0x1a6   :  { %v332_v36 = vmax.f32 %v294_v29, %v320_v34  ;;  %v304_v37 = vadd.f32 %v1006_v4, %v303_v35  ;;  %v323_v47 = vmul.f32 0.2, %v309_v42  ;;  %v1020_v34 = vld [vmem:[%s1797_s7] ss:$0 sm:$0xff] }
 0x1a8   :  { %v322_v43 = vmul.f32 0.2, %v304_v37  ;;  %555 = vmatprep.mubr.f32.mxu0 %v332_v36  ;;  %v335_v51 = vmax.f32 %v309_v42, %v323_v47 }
 0x1a9   :  { %556 = vmatmul.mubr.f32.vlgmr.msra.gmra.mxu0 %v328_v39 }
 0x1aa   :  { %560 = vmatprep.mubr.f32.mxu0 %v333_v41  ;;  %v334_v48 = vmax.f32 %v304_v37, %v322_v43  ;;  %1255 = vmatpush3.msra.mxu0 %v700_v54  ;;  %v793_v54 = vld [vmem:[%s1796_s10 + $0x18] sm:$0xff] }
 0x1ab   :  { %1256 = vmatprep.subr.mxu0 %v699_v55 }
 0x1ac   :  { %1257 = vmatpush3.msra.mxu0 %v699_v55  ;;  %v904_v55 = vld [vmem:[%s1798_s11 + $0x68] sm:$0xff] }
 0x1ad   :  { %561 = vmatmul.mubr.f32.gmra.mxu0 %v329_v44  ;;  %1258 = vmatprep.subr.mxu0 %v698_v56 }
 0x1ae   :  { %565 = vmatprep.mubr.f32.mxu0 %v334_v48  ;;  %1259 = vmatpush3.msra.mxu0 %v698_v56  ;;  %v903_v56 = vld [vmem:[%s1798_s11 + $0x60] sm:$0xff] }
 0x1af   :  { %1260 = vmatprep.subr.mxu0 %v697_v57 }
 0x1b0   :  { %1261 = vmatpush3.msra.mxu0 %v697_v57  ;;  %v902_v57 = vld [vmem:[%s1798_s11 + $0x58] sm:$0xff] }
 0x1b1   :  { %566 = vmatmul.mubr.f32.gmra.mxu0 %v330_v50  ;;  %1262 = vmatprep.subr.mxu0 %v696_v58  ;;  %v791_v50 = vld [vmem:[%s1796_s10 + $0x8] sm:$0xff] }
 0x1b2   :  { %570 = vmatprep.mubr.f32.mxu0 %v335_v51  ;;  %1263 = vmatpush3.msra.mxu0 %v696_v58  ;;  %v906_v51 = vld [vmem:[%s1798_s11 + $0x78] sm:$0xff]  ;;  %v901_v58 = vld [vmem:[%s1798_s11 + $0x50] sm:$0xff] }
 0x1b3   :  { %1264 = vmatprep.subr.mxu0 %v695_v59 }
 0x1b4   :  { %1265 = vmatpush3.msra.mxu0 %v695_v59  ;;  %v900_v59 = vld [vmem:[%s1798_s11 + $0x48] sm:$0xff] }
 0x1b5   :  { %571 = vmatmul.mubr.f32.gmra.mxu0 %v331_v52  ;;  %1266 = vmatprep.subr.mxu0 %v694_v60  ;;  %v792_v52 = vld [vmem:[%s1796_s10 + $0x10] sm:$0xff] }
 0x1b6   :  { %1267 = vmatpush3.msra.mxu0 %v694_v60  ;;  %v899_v60 = vld [vmem:[%s1798_s11 + $0x40] sm:$0xff] }
 0x1b7   :  { %1268 = vmatprep.subr.mxu0 %v693_v61 }
 0x1b8   :  { %1269 = vmatpush3.msra.mxu0 %v693_v61  ;;  %v686_v61 = vld [vmem:[%s1794_s9 + $0x8] sm:$0xff] }
 0x1b9   :  { %1270 = vmatprep.subr.mxu0 %v692_v62 }
 0x1ba   :  { %1271 = vmatpush3.msra.mxu0 %v692_v62  ;;  %v898_v62 = vld [vmem:[%s1798_s11 + $0x38] sm:$0xff] }
 0x1bb   :  { %1272 = vmatprep.subr.mxu0 %v691_v63 }
 0x1bc   :  { %1273 = vmatpush3.msra.mxu0 %v691_v63  ;;  %v685_v63 = vld [vmem:[%s1794_s9] sm:$0xff] }
 0x1bd   :  { %1274 = vmatprep.subr.mxu0 %v690_v0 }
 0x1be   :  { %1275 = vmatpush3.msra.mxu0 %v690_v0  ;;  %v897_v0 = vld [vmem:[%s1798_s11 + $0x30] sm:$0xff] }
 0x1bf   :  { %1276 = vmatprep.subr.mxu0 %v689_v1 }
 0x1c0   :  { %1277 = vmatpush3.msra.mxu0 %v689_v1  ;;  %v896_v1 = vld [vmem:[%s1798_s11 + $0x28] sm:$0xff] }
 0x1c1   :  { %1278 = vmatprep.subr.mxu0 %v688_v2 }
 0x1c2   :  { %1279 = vmatpush3.msra.mxu0 %v688_v2  ;;  %v895_v2 = vld [vmem:[%s1798_s11 + $0x20] sm:$0xff] }
 0x1c3   :  { %1280 = vmatprep.subr.mxu0 %v687_v3 }
 0x1c4   :  { %1281 = vmatpush3.msra.mxu0 %v687_v3  ;;  %v894_v3 = vld [vmem:[%s1798_s11 + $0x18] sm:$0xff] }
 0x1c5   :  { %1282 = vmatprep.subr.mxu0 %v686_v61 }
 0x1c6   :  { %1283 = vmatpush3.msra.mxu0 %v686_v61 }
 0x1c7   :  { %1284 = vmatprep.subr.mxu0 %v685_v63 }
 0x1c8   :  { %1285 = vmatpush3.msra.mxu0 %v685_v63 }
 0x259   :  { %v1236_v4 = vpop.f32.mrf.mxu1 }
 0x25a   :  { %v431_v8 = vadd.f32 %v1236_v4, %v1019_v5  ;;  %v893_v4 = vld [vmem:[%s1798_s11 + $0x10] sm:$0xff] }
 0x25b   :  { %v425_v6 = vpop.f32.mrf.mxu1 }
 0x25c   :  { %v426_v11 = vadd.f32 %v1019_v5, %v425_v6  ;;  %v445_v14 = vmul.f32 0.2, %v431_v8  ;;  %v891_v6 = vld [vmem:[%s1798_s11] sm:$0xff] }
 0x25d   :  { %v1239_v7 = vpop.f32.mrf.mxu1 }
 0x25e   :  { %v441_v9 = vadd.f32 %v1239_v7, %v1019_v5  ;;  %v444_v17 = vmul.f32 0.2, %v426_v11  ;;  %v449_v19 = vmax.f32 %v431_v8, %v445_v14 }
 0x25f   :  { %v435_v10 = vpop.f32.mrf.mxu1 }
 0x260   :  { %v447_v12 = vmul.f32 0.2, %v441_v9  ;;  %v436_v13 = vadd.f32 %v1019_v5, %v435_v10  ;;  %v448_v20 = vmax.f32 %v426_v11, %v444_v17  ;;  %v892_v5 = vld [vmem:[%s1798_s11 + $0x8] sm:$0xff] }
 0x262   :  { %v451_v15 = vmax.f32 %v441_v9, %v447_v12  ;;  %v446_v16 = vmul.f32 0.2, %v436_v13 }
 0x264   :  { %v450_v18 = vmax.f32 %v436_v13, %v446_v16  ;;  %1240 = vmatprep.subr.mxu1 %v451_v15 }
 0x265   :  { %1241 = vmatpush3.msra.mxu1 %v451_v15 }
 0x266   :  { %1242 = vmatprep.subr.mxu1 %v450_v18 }
 0x267   :  { %1243 = vmatpush3.msra.mxu1 %v450_v18 }
 0x268   :  { %1244 = vmatprep.subr.mxu1 %v449_v19 }
 0x269   :  { %v1101_v21 = vpop.f32.mrf.mxu0  ;;  %1245 = vmatpush3.msra.mxu1 %v449_v19 }
 0x26a   :  { %1246 = vmatprep.subr.mxu1 %v448_v20 }
 0x26b   :  { %v1102_v24 = vpop.f32.mrf.mxu0  ;;  %1247 = vmatpush3.msra.mxu1 %v448_v20 }
 0x26c   :  { %1249 = vmatmul.mubr.msk.f32.vlgmr.msra.gmra.mxu1 %vm49_vm0, %v585_v22  ;;  %v1103_v36 = vadd.f32 %v1102_v24, %v1101_v21 }
 0x26d   :  { %v1104_v25 = vpop.f32.mrf.mxu0  ;;  %1251 = vmatprep.mubr.msk.f32.mxu1 %vm49_vm0, %v586_v23 }
 0x26e   :  { %v558_v41 = vadd.f32 %v1103_v36, %v1020_v34 }
 0x26f   :  { %v1105_v28 = vpop.f32.mrf.mxu0 }
 0x270   :  { %1252 = vmatmul.mubr.msk.f32.gmra.mxu1 %vm49_vm0, %v587_v26  ;;  %v1106_v33 = vadd.f32 %v1105_v28, %v1104_v25  ;;  %v576_v46 = vmul.f32 0.2, %v558_v41 }
 0x271   :  { %v1107_v29 = vpop.f32.mrf.mxu0  ;;  %1300 = vmatprep.mubr.msk.f32.mxu1 %vm49_vm0, %v790_v27 }
 0x272   :  { %v563_v39 = vadd.f32 %v1106_v33, %v1020_v34  ;;  %v580_v49 = vmax.f32 %v558_v41, %v576_v46 }
 0x273   :  { %v1108_v30 = vpop.f32.mrf.mxu0 }
 0x274   :  { %v1109_v31 = vadd.f32 %v1108_v30, %v1107_v29  ;;  %v577_v44 = vmul.f32 0.2, %v563_v39 }
 0x275   :  { %v1110_v32 = vpop.f32.mrf.mxu0 }
 0x276   :  { %v568_v37 = vadd.f32 %v1109_v31, %v1020_v34  ;;  %v581_v48 = vmax.f32 %v563_v39, %v577_v44 }
 0x277   :  { %v1111_v35 = vpop.f32.mrf.mxu0 }
 0x278   :  { %v1112_v38 = vadd.f32 %v1111_v35, %v1110_v32  ;;  %v578_v42 = vmul.f32 0.2, %v568_v37 }
 0x27a   :  { %v573_v40 = vadd.f32 %v1112_v38, %v1020_v34  ;;  %v582_v47 = vmax.f32 %v568_v37, %v578_v42 }
 0x27c   :  { %v579_v43 = vmul.f32 0.2, %v573_v40 }
 0x27e   :  { %v583_v45 = vmax.f32 %v573_v40, %v579_v43 }
 0x280   :  { %1292 = vmatprep.subr.mxu1 %v583_v45 }
 0x281   :  { %1293 = vmatpush3.msra.mxu1 %v583_v45 }
 0x282   :  { %1294 = vmatprep.subr.mxu1 %v582_v47 }
 0x283   :  { %1295 = vmatpush3.msra.mxu1 %v582_v47 }
 0x284   :  { %1296 = vmatprep.subr.mxu1 %v581_v48 }
 0x285   :  { %1297 = vmatpush3.msra.mxu1 %v581_v48 }
 0x286   :  { %1298 = vmatprep.subr.mxu1 %v580_v49 }
 0x287   :  { %1299 = vmatpush3.msra.mxu1 %v580_v49 }
 0x288   :  { %1301 = vmatmul.mubr.msk.f32.vlgmr.msra.gmra.mxu1 %vm49_vm0, %v791_v50  ;;  %1306 = vmatprep.subr.mxu1 %v906_v51 }
 0x289   :  { %1303 = vmatprep.mubr.msk.f32.mxu1 %vm49_vm0, %v792_v52  ;;  %1307 = vmatpush3.msra.mxu1 %v906_v51 }
 0x28a   :  { %1308 = vmatprep.subr.mxu1 %v905_v53 }
 0x28b   :  { %1309 = vmatpush3.msra.mxu1 %v905_v53 }
 0x28c   :  { %1304 = vmatmul.mubr.msk.f32.gmra.mxu1 %vm49_vm0, %v793_v54  ;;  %1310 = vmatprep.subr.mxu1 %v904_v55 }
 0x28d   :  { %1311 = vmatpush3.msra.mxu1 %v904_v55 }
 0x28e   :  { %1312 = vmatprep.subr.mxu1 %v903_v56 }
 0x28f   :  { %1313 = vmatpush3.msra.mxu1 %v903_v56 }
 0x290   :  { %1314 = vmatprep.subr.mxu1 %v902_v57 }
 0x291   :  { %1315 = vmatpush3.msra.mxu1 %v902_v57 }
 0x292   :  { %1316 = vmatprep.subr.mxu1 %v901_v58 }
 0x293   :  { %1317 = vmatpush3.msra.mxu1 %v901_v58 }
 0x294   :  { %1318 = vmatprep.subr.mxu1 %v900_v59 }
 0x295   :  { %1319 = vmatpush3.msra.mxu1 %v900_v59 }
 0x296   :  { %1320 = vmatprep.subr.mxu1 %v899_v60 }
 0x297   :  { %1321 = vmatpush3.msra.mxu1 %v899_v60 }
 0x298   :  { %1322 = vmatprep.subr.mxu1 %v898_v62 }
 0x299   :  { %1323 = vmatpush3.msra.mxu1 %v898_v62 }
 0x29a   :  { %1324 = vmatprep.subr.mxu1 %v897_v0 }
 0x29b   :  { %1325 = vmatpush3.msra.mxu1 %v897_v0 }
 0x29c   :  { %1326 = vmatprep.subr.mxu1 %v896_v1 }
 0x29d   :  { %1327 = vmatpush3.msra.mxu1 %v896_v1 }
 0x29e   :  { %1328 = vmatprep.subr.mxu1 %v895_v2 }
 0x29f   :  { %1329 = vmatpush3.msra.mxu1 %v895_v2 }
 0x2a0   :  { %1330 = vmatprep.subr.mxu1 %v894_v3 }
 0x2a1   :  { %1331 = vmatpush3.msra.mxu1 %v894_v3 }
 0x2a2   :  { %1332 = vmatprep.subr.mxu1 %v893_v4 }
 0x2a3   :  { %1333 = vmatpush3.msra.mxu1 %v893_v4 }
 0x2a4   :  { %1334 = vmatprep.subr.mxu1 %v892_v5 }
 0x2a5   :  { %1335 = vmatpush3.msra.mxu1 %v892_v5 }
 0x2a6   :  { %1336 = vmatprep.subr.mxu1 %v891_v6 }
 0x2a7   :  { %1337 = vmatpush3.msra.mxu1 %v891_v6 }
 0x32c   :  { %v1250_v7 = vpop.f32.mrf.mxu1 }
 0x32e   :  { %v666_v8 = vpop.f32.mrf.mxu1 }
 0x32f   :  { %1286 = vmatprep.mubr.f32.mxu0 %v666_v8 }
 0x330   :  { %v1253_v9 = vpop.f32.mrf.mxu1  ;;  %1287 = vmatmul.mubr.f32.vlgmr.msra.gmra.mxu0 %v1250_v7 }
 0x332   :  { %v676_v10 = vpop.f32.mrf.mxu1 }
 0x333   :  { %1289 = vmatprep.mubr.f32.mxu0 %v676_v10 }
 0x334   :  { %1290 = vmatmul.mubr.f32.gmra.mxu0 %v1253_v9 }
 0x348   :  { %v1302_v11 = vpop.f32.mrf.mxu1 }
 0x34a   :  { %v872_v12 = vpop.f32.mrf.mxu1 }
 0x34b   :  { %1338 = vmatprep.mubr.f32.mxu1 %v872_v12 }
 0x34c   :  { %v1305_v13 = vpop.f32.mrf.mxu1  ;;  %1339 = vmatmul.mubr.f32.vlgmr.msra.gmra.mxu1 %v1302_v11 }
 0x34e   :  { %v882_v14 = vpop.f32.mrf.mxu1 }
 0x34f   :  { %1341 = vmatprep.mubr.f32.mxu1 %v882_v14 }
 0x350   :  { %1342 = vmatmul.mubr.f32.gmra.mxu1 %v1305_v13 }
 0x3f0   :  { %v1288_v15 = vpop.f32.mrf.mxu0 }
 0x3f1   :  { %787 = vst [vmem:[%s1799_s12 + $0x8] sm:$0xff] %v1288_v15 }
 0x3f2   :  { %v767_v16 = vpop.f32.mrf.mxu0 }
 0x3f3   :  { %786 = vst [vmem:[%s1799_s12] sm:$0xff] %v767_v16 }
 0x3f4   :  { %v1291_v17 = vpop.f32.mrf.mxu0 }
 0x3f5   :  { %789 = vst [vmem:[%s1799_s12 + $0x18] sm:$0xff] %v1291_v17 }
 0x3f6   :  { %v777_v18 = vpop.f32.mrf.mxu0 }
 0x3f7   :  { %788 = vst [vmem:[%s1799_s12 + $0x10] sm:$0xff] %v777_v18 }
 0x40c   :  { %v1340_v19 = vpop.f32.mrf.mxu1 }
 0x40d   :  { %993 = vst [vmem:[%s1800_s13 + $0x8] sm:$0xff] %v1340_v19 }
 0x40e   :  { %v973_v20 = vpop.f32.mrf.mxu1 }
 0x40f   :  { %992 = vst [vmem:[%s1800_s13] sm:$0xff] %v973_v20 }
 0x410   :  { %v1343_v21 = vpop.f32.mrf.mxu1 }
 0x411   :  { %995 = vst [vmem:[%s1800_s13 + $0x18] sm:$0xff] %v1343_v21 }
 0x412   :  { %v983_v22 = vpop.f32.mrf.mxu1 }
 0x413   :  { %994 = vst [vmem:[%s1800_s13 + $0x10] sm:$0xff] %v983_v22 }

</bundles_post_ra>
